<compile_context>
chip_gen: v7x
topology: tpu7x:2x2x1
jax: 0.10.0
libtpu: 0.0.40
codegen_flags: <defaults>
</compile_context>

<pallas_src>
import dataclasses
import functools
from typing import Any, Optional

import jax
import jax.numpy as jnp
from jax.experimental import pallas as pl
from jax.experimental.pallas import tpu as pltpu

_MIB = 1 << 20


def _round_up(v: int, m: int) -> int:
    return ((v + m - 1) // m) * m


# ---------------------------------------------------------------------------
# Kernel body
# ---------------------------------------------------------------------------
def _ffn_kernel(x_ref, w_ref, b_ref, *rest, residual: bool, single_k: bool):
    """One (tb, tn) output tile; accumulates over the K grid axis unless single_k."""
    idx = 0
    xres_ref = None
    if residual:
        xres_ref = rest[0]
        idx = 1
    o_ref = rest[idx]
    acc_ref = None if single_k else rest[idx + 1]

    def epilogue(acc_f32):
        y = acc_f32 + b_ref[...]          # bias (1, tn) broadcasts over rows, f32
        y = jnp.maximum(y, 0.0)           # activation = ReLU
        if residual:
            # residual_layer: (x + act(linear(x))) * RESIDUAL_NORMALIZATION_CONSTANT (==1)
            y = xres_ref[...].astype(jnp.float32) + y
        o_ref[...] = y.astype(o_ref.dtype)

    if single_k:
        # No accumulator scratch / pl.when needed: one MXU pass, write directly.
        epilogue(jnp.dot(x_ref[...], w_ref[...], preferred_element_type=jnp.float32))
    else:
        k = pl.program_id(2)

        @pl.when(k == 0)
        def _init():
            acc_ref[...] = jnp.zeros_like(acc_ref)

        acc_ref[...] += jnp.dot(
            x_ref[...], w_ref[...], preferred_element_type=jnp.float32
        )

        @pl.when(k == pl.num_programs(2) - 1)
        def _finalize():
            epilogue(acc_ref[...])


# ---------------------------------------------------------------------------
# Init-time preparation (pad / cast / tile selection happens ONCE here)
# ---------------------------------------------------------------------------
@dataclasses.dataclass(frozen=True)
class _Config:
    in_features: int
    out_features: int
    Kp: int
    Np: int
    tn: int
    tk: int
    block_batch: int
    residual: bool
    compute_dtype: Any
    out_dtype: Any
    vmem_limit_bytes: int
    input_buffering: int


def _vmem_footprint_bytes(tb, tn, tk, in_itemsize, out_itemsize, residual) -> int:
    fp = 2 * tb * tk * in_itemsize        # x tile, double-buffered
    fp += 2 * tk * tn * in_itemsize       # W^T tile, double-buffered
    fp += 2 * tn * 4                      # bias tile (f32)
    fp += 2 * tb * tn * out_itemsize      # output tile, double-buffered
    fp += tb * tn * 4                     # f32 accumulator scratch
    if residual:
        fp += 2 * tb * tn * 4             # f32 residual tile, double-buffered
    return fp


def prepare_flexible_residual_block(
    weight,                      # torch-layout [out_features, in_features]
    bias,                        # [out_features]
    *,
    block_batch: int = 512,
    block_n: int = 1024,
    block_k: int = 2048,
    compute_dtype=jnp.bfloat16,  # bf16 MXU inputs, f32 accumulation/epilogue
    out_dtype=jnp.float32,       # set to jnp.bfloat16 to halve output writeback
    residual: Optional[bool] = None,
    input_buffering: int = 2,    # >2 -> pl.Buffered(n) on the x / W streams
):
    """Returns (w_padded, b_padded, cfg): all per-call pad/cast/transpose hoisted here."""
    out_features, in_features = weight.shape
    K, N = in_features, out_features
    if residual is None:
        residual = (K == N)      # matches the PyTorch module's shape-based choice

    in_itemsize = jnp.dtype(compute_dtype).itemsize
    out_itemsize = jnp.dtype(out_dtype).itemsize

    tn = min(_round_up(block_n, 128), _round_up(N, 128))
    tk = min(_round_up(block_k, 128), _round_up(K, 128))
    tb = _round_up(block_batch, 8)

    # Chip-aware VMEM budget (v7x has 64 MiB physical, v5e/v6e 128 MiB).
    try:
        info = pltpu.get_tpu_info()
        vmem_cap = int(getattr(info, "vmem_capacity_bytes", 64 * _MIB))
    except Exception:
        vmem_cap = 64 * _MIB
    budget = min(int(0.70 * vmem_cap), 100 * _MIB)

    # Shrink tiles until the double-buffered footprint fits the budget
    # (prefer shrinking K, then N, then batch).
    while _vmem_footprint_bytes(tb, tn, tk, in_itemsize, out_itemsize, residual) > budget:
        if tk >= 1024 and (tk // 2) % 128 == 0:
            tk //= 2
        elif tn >= 512 and (tn // 2) % 128 == 0:
            tn //= 2
        elif tb >= 256 and (tb // 2) % 8 == 0:
            tb //= 2
        else:
            break

    footprint = _vmem_footprint_bytes(tb, tn, tk, in_itemsize, out_itemsize, residual)
    vmem_limit = int(min(max(footprint + 16 * _MIB, 32 * _MIB),
                         0.85 * vmem_cap, 100 * _MIB))

    Kp = _round_up(K, tk)
    Np = _round_up(N, tn)

    # Pre-transpose / pre-pad / pre-cast the parameters ONCE (init time).
    wt = jnp.asarray(weight).T                               # [in, out]
    if (Kp, Np) != (K, N):
        wt = jnp.pad(wt, ((0, Kp - K), (0, Np - N)))
    w_pad = wt.astype(compute_dtype)

    b = jnp.asarray(bias)
    if Np != N:
        b = jnp.pad(b, (0, Np - N))
    b_pad = b.reshape(1, Np).astype(jnp.float32)

    cfg = _Config(
        in_features=K, out_features=N, Kp=Kp, Np=Np, tn=tn, tk=tk,
        block_batch=tb, residual=residual,
        compute_dtype=compute_dtype, out_dtype=out_dtype,
        vmem_limit_bytes=vmem_limit, input_buffering=input_buffering,
    )
    return w_pad, b_pad, cfg


# ---------------------------------------------------------------------------
# Forward (jit this with cfg static)
# ---------------------------------------------------------------------------
def _forward(x, w_pad, b_pad, cfg: _Config):
    B, K = x.shape
    assert K == cfg.in_features, "x feature dim does not match prepared weights"
    N, Kp, Np = cfg.out_features, cfg.Kp, cfg.Np
    residual = cfg.residual
    cd = cfg.compute_dtype
    out_dtype = x.dtype if cfg.out_dtype is None else cfg.out_dtype

    tb = min(_round_up(cfg.block_batch, 8), _round_up(B, 8))
    Bp = _round_up(B, tb)

    # v7x occupancy: with a single batch tile, expose >=2 blocks on the parallel
    # N axis so both TensorCores get work (harmless on single-core chips).
    tn = cfg.tn
    tk = cfg.tk
    if Bp // tb == 1:
        while Np // tn < 2 and tn >= 256 and (tn // 2) % 128 == 0:
            tn //= 2

    grid = (Bp // tb, Np // tn, Kp // tk)
    single_k = grid[2] == 1

    # Per-call x padding (zeros in the K pad region keep accumulation exact).
    xp = x if (Bp, Kp) == (B, K) else jnp.pad(x, ((0, Bp - B), (0, Kp - K)))
    x_mm = xp.astype(cd)

    def _maybe_buffered(spec_shape, index_map):
        if cfg.input_buffering > 2:
            return pl.BlockSpec(spec_shape, index_map,
                                pipeline_mode=pl.Buffered(cfg.input_buffering))
        return pl.BlockSpec(spec_shape, index_map)

    in_specs = [
        _maybe_buffered((tb, tk), lambda i, j, k: (i, k)),   # x tile (matmul input)
        _maybe_buffered((tk, tn), lambda i, j, k: (k, j)),   # W^T tile
        pl.BlockSpec((1, tn), lambda i, j, k: (0, j)),       # bias tile (f32)
    ]
    operands = [x_mm, w_pad, b_pad]

    if residual:
        # Residual stays in x's original precision; reuse the already-padded
        # buffer when the padded K/N shapes coincide (no second pad copy).
        if Np == Kp:
            x_res = xp
        else:
            x_res = x if (Bp, Np) == (B, N) else jnp.pad(x, ((0, Bp - B), (0, Np - N)))
        in_specs.append(pl.BlockSpec((tb, tn), lambda i, j, k: (i, j)))
        operands.append(x_res)

    in_itemsize = jnp.dtype(cd).itemsize
    out_itemsize = jnp.dtype(out_dtype).itemsize
    bytes_accessed = (
        Bp * Kp * in_itemsize * (Np // tn)         # x re-read once per N tile
        + Kp * Np * in_itemsize * (Bp // tb)       # W re-read once per batch tile
        + Np * 4 * (Bp // tb)                      # bias
        + Bp * Np * out_itemsize                   # output writeback
        + (Bp * Np * jnp.dtype(x.dtype).itemsize if residual else 0)
    )
    cost = pl.CostEstimate(flops=2 * Bp * Kp * Np, transcendentals=0,
                           bytes_accessed=bytes_accessed)

    scratch_shapes = [] if single_k else [pltpu.VMEM((tb, tn), jnp.float32)]
    kernel = functools.partial(_ffn_kernel, residual=residual, single_k=single_k)

    out = pl.pallas_call(
        kernel,
        out_shape=jax.ShapeDtypeStruct((Bp, Np), out_dtype),
        grid_spec=pltpu.PrefetchScalarGridSpec(
            num_scalar_prefetch=0,
            grid=grid,
            in_specs=in_specs,
            out_specs=pl.BlockSpec((tb, tn), lambda i, j, k: (i, j)),
            scratch_shapes=scratch_shapes,
        ),
        compiler_params=pltpu.CompilerParams(
            dimension_semantics=("parallel", "parallel", "arbitrary"),
            vmem_limit_bytes=cfg.vmem_limit_bytes,
        ),
        cost_estimate=cost,
    )(*operands)

    return out[:B, :N]


class FlexibleResidualBlockPallas:
    """JAX/Pallas equivalent of FlexibleResidualBlock (ReLU activation)."""

    def __init__(self, weight, bias, **kwargs):
        self.w, self.b, self.cfg = prepare_flexible_residual_block(weight, bias, **kwargs)
        self._fwd = jax.jit(_forward, static_argnames=("cfg",))

    def __call__(self, x):
        return self._fwd(x, self.w, self.b, cfg=self.cfg)


# ---------------------------------------------------------------------------
# Test / demo
# ---------------------------------------------------------------------------
def _torch_style_linear_init(key, in_size, out_size):
    # nn.Linear default init: U(-1/sqrt(in), 1/sqrt(in)) for both W and b.
    kw, kb = jax.random.split(key)
    bound = 1.0 / (in_size ** 0.5)
    w = jax.random.uniform(kw, (out_size, in_size), jnp.float32, -bound, bound)
    b = jax.random.uniform(kb, (out_size,), jnp.float32, -bound, bound)
    return w, b


def _reference(x, w, b, residual, compute_dtype=None):
    xm = x if compute_dtype is None else x.astype(compute_dtype).astype(jnp.float32)
    wm = w if compute_dtype is None else w.astype(compute_dtype).astype(jnp.float32)
    y = jnp.dot(xm, wm.T, precision=jax.lax.Precision.HIGHEST) + b
    y = jnp.maximum(y, 0.0)
    return x + y if residual else y


if __name__ == "__main__":
    key = jax.random.PRNGKey(0)
    kx1, kp1, kp2, kx3, kp3, kx4, kp4 = jax.random.split(key, 7)

    # Case 1: input_size == output_size -> residual layer, exact f32 path.
    batch, hidden, out_other = 8, 32, 64
    x1 = jax.random.normal(kx1, (batch, hidden), jnp.float32)
    w1, b1 = _torch_style_linear_init(kp1, hidden, hidden)
    blk1 = FlexibleResidualBlockPallas(w1, b1, compute_dtype=jnp.float32)
    y1 = jax.block_until_ready(blk1(x1))
    assert jnp.allclose(y1, _reference(x1, w1, b1, True), atol=1e-4, rtol=1e-4)

    # Case 2: input_size != output_size -> standard layer, exact f32 path.
    w2, b2 = _torch_style_linear_init(kp2, hidden, out_other)
    blk2 = FlexibleResidualBlockPallas(w2, b2, compute_dtype=jnp.float32)
    y2 = jax.block_until_ready(blk2(x1))
    assert y2.shape == (batch, out_other)
    assert jnp.allclose(y2, _reference(x1, w2, b2, False), atol=1e-4, rtol=1e-4)

    # Case 3: non-aligned sizes, default bf16 MXU inputs (f32 accumulation),
    # exercises padding + the occupancy tn-split.
    B3, H3 = 300, 200
    x3 = jax.random.normal(kx3, (B3, H3), jnp.float32)
    w3, b3 = _torch_style_linear_init(kp3, H3, H3)
    blk3 = FlexibleResidualBlockPallas(w3, b3)               # compute_dtype=bf16 default
    y3 = jax.block_until_ready(blk3(x3))
    assert y3.shape == (B3, H3)
    ref3 = _reference(x3, w3, b3, True, compute_dtype=jnp.bfloat16)
    assert jnp.allclose(y3, ref3, atol=5e-3, rtol=5e-3)

    # Case 4: multi-K-step accumulator path (small explicit tiles), exact f32.
    B4, H4 = 16, 256
    x4 = jax.random.normal(kx4, (B4, H4), jnp.float32)
    w4, b4 = _torch_style_linear_init(kp4, H4, H4)
    blk4 = FlexibleResidualBlockPallas(
        w4, b4, compute_dtype=jnp.float32,
        block_batch=8, block_n=128, block_k=128)             # grid (2, 2, 2)
    y4 = jax.block_until_ready(blk4(x4))
    assert jnp.allclose(y4, _reference(x4, w4, b4, True), atol=1e-3, rtol=1e-3)

    print("KERNEL_OK")
</pallas_src>

<mosaic_0001>
module attributes {stable_mosaic.version = 11 : i64} {
  func.func @_ffn_kernel(%arg0: i32, %arg1: i32, %arg2: i32, %arg3: memref<8x128xf32, #tpu.memory_space<vmem>>, %arg4: memref<128x128xf32, #tpu.memory_space<vmem>>, %arg5: memref<1x128xf32, #tpu.memory_space<vmem>>, %arg6: memref<8x128xf32, #tpu.memory_space<vmem>>, %arg7: memref<8x128xf32, #tpu.memory_space<vmem>>) attributes {dimension_semantics = [#tpu.dimension_semantics<parallel>, #tpu.dimension_semantics<parallel>, #tpu.dimension_semantics<arbitrary>], iteration_bounds = array<i64: 1, 1, 1>, scalar_prefetch = 0 : i64, scratch_operands = 0 : i64, tpu.core_type = #tpu.core_type<tc>, window_params = [{transform_indices = @transform_0, window_bounds = array<i64: 8, 128>}, {transform_indices = @transform_1, window_bounds = array<i64: 128, 128>}, {transform_indices = @transform_2, window_bounds = array<i64: 1, 128>}, {transform_indices = @transform_3, window_bounds = array<i64: 8, 128>}, {transform_indices = @transform_4, window_bounds = array<i64: 8, 128>}]} {
    %c0 = arith.constant 0 : index
    %c0_0 = arith.constant 0 : index
    %0 = vector.load %arg3[%c0, %c0_0] : memref<8x128xf32, #tpu.memory_space<vmem>>, vector<8x128xf32>
    %c0_1 = arith.constant 0 : index
    %c0_2 = arith.constant 0 : index
    %1 = vector.load %arg4[%c0_1, %c0_2] : memref<128x128xf32, #tpu.memory_space<vmem>>, vector<128x128xf32>
    %cst = arith.constant dense<0.000000e+00> : vector<8x128xf32>
    %2 = tpu.matmul %0, %1, %cst {dimension_numbers = #tpu.dot_dimension_numbers<[1], [0], [0], [1], [0, 0, 1, 1], [], []>} : vector<8x128xf32>, vector<128x128xf32>, vector<8x128xf32> -> vector<8x128xf32>
    %c0_3 = arith.constant 0 : index
    %c0_4 = arith.constant 0 : index
    %3 = vector.load %arg5[%c0_3, %c0_4] : memref<1x128xf32, #tpu.memory_space<vmem>>, vector<1x128xf32>
    %4 = vector.broadcast %3 : vector<1x128xf32> to vector<8x128xf32>
    %5 = arith.addf %2, %4 : vector<8x128xf32>
    %cst_5 = arith.constant 0.000000e+00 : f32
    %6 = vector.broadcast %cst_5 : f32 to vector<8x128xf32>
    %7 = arith.maximumf %5, %6 : vector<8x128xf32>
    %c0_6 = arith.constant 0 : index
    %c0_7 = arith.constant 0 : index
    %8 = vector.load %arg6[%c0_6, %c0_7] : memref<8x128xf32, #tpu.memory_space<vmem>>, vector<8x128xf32>
    %9 = arith.addf %8, %7 : vector<8x128xf32>
    %c0_8 = arith.constant 0 : index
    %c0_9 = arith.constant 0 : index
    %10 = vector.load %arg7[%c0_8, %c0_9] : memref<8x128xf32, #tpu.memory_space<vmem>>, vector<8x128xf32>
    tpu.vector_store %arg7[%c0_8, %c0_9], %9 {strides = array<i32>} : memref<8x128xf32, #tpu.memory_space<vmem>>, vector<8x128xf32>,
    return
  }
  func.func @transform_0(%arg0: i32, %arg1: i32, %arg2: i32) -> (i32, i32) {
    %c0_i32 = arith.constant 0 : i32
    return %arg0, %arg2 : i32, i32
  }
  func.func @transform_1(%arg0: i32, %arg1: i32, %arg2: i32) -> (i32, i32) {
    %c0_i32 = arith.constant 0 : i32
    return %arg2, %arg1 : i32, i32
  }
  func.func @transform_2(%arg0: i32, %arg1: i32, %arg2: i32) -> (i32, i32) {
    %c0_i32 = arith.constant 0 : i32
    %c0_i32_0 = arith.constant 0 : i32
    return %c0_i32, %arg1 : i32, i32
  }
  func.func @transform_3(%arg0: i32, %arg1: i32, %arg2: i32) -> (i32, i32) {
    %c0_i32 = arith.constant 0 : i32
    return %arg0, %arg1 : i32, i32
  }
  func.func @transform_4(%arg0: i32, %arg1: i32, %arg2: i32) -> (i32, i32) {
    %c0_i32 = arith.constant 0 : i32
    return %arg0, %arg1 : i32, i32
  }
}

</mosaic_0001>

<bundles_post_ra>
// kernel: _forward.1
= control target key start
LH: loop header
LB: loop body
LE: loop exit
PB: predicated region body
PF: predicated region fallthrough
CT: control target
= control target key end

     0   :  { %9 = vsyncpa [#allocation3], 0  ;;  %s342_s0 = inlined_call_operand.vmem [shape: f32[8,128], index: 0, kind: input, shape index: {}, may-alias: {0,3}]   ;;  %s343_s1 = inlined_call_operand.hbm [shape: f32[128,128], index: 1, kind: input, shape index: {}]   ;;  %s344_s2 = inlined_call_operand.vmem [shape: f32[1,128], index: 2, kind: input, shape index: {}]   ;;  %s345_s3 = inlined_call_operand.vmem [shape: f32[8,128], index: 3, kind: input, shape index: {}, may-alias: {0,3}]   ;;  %s346_s4 = inlined_call_operand.hbm [shape: f32[8,128], index: 4, kind: output, shape index: {}]  }
   0x1   :  { %10 = vsyncpa [#allocation4], 0  ;;  %s277_s15 = smov [#allocation2]   ;;  %s229_s19 = scalar_lea.hbm %s343_s1, 2048 }
   0x2   :  { %s18_s16 = sshll.u32 %s277_s15, 4  ;;  %p230_p0 = scmp.ne.s32.totalorder %s343_s1, %s229_s19  ;;  %s19_s16 = int_to_ptr.vmem [resolvable:$true] %s18_s16 }
   0x3   :  { %p233_p1 = scmp.lt.u32.totalorder %s229_s19, %s343_s1 }
   0x5   :  { %p235_p2 = pnand %p233_p1, %p230_p0 }
   0x7   :  { %238 = shalt.err (!%p235_p2)
}
   0x8   :  { %s239_s24 = scalar_lea.vmem %s19_s16, 2048  ;;  %p244_p4 = scmp.lt.s32.totalorder %s19_s16, %s19_s16 }
   0x9   :  { %p240_p3 = scmp.ne.s32.totalorder %s19_s16, %s239_s24  ;;  %p245_p5 = scmp.lt.s32.totalorder %s239_s24, %s239_s24 }
   0xb   :  { %p246_p6 = por %p245_p5, %p244_p4 }
   0xd   :  { %p247_p7 = pnand %p246_p6, %p240_p3 }
   0xf   :  { %250 = shalt.err (!%p247_p7)
}
  0x10   :  { %s278_s25 = smov 128   ;;  %s279_s26 = smov 8  }
  0x11   :  { %24 = dma.hbm_to_vmem [thread:$0]  %s343_s1, 2048, %s19_s16, [#allocation3], %s278_s25, %s278_s25, %s279_s26  }
  0x12   :  { %273 = dma.done.wait [#allocation3], 2048  }
  0x13   :  { %274 = vsyncadd [#allocation3], 4294965248  ;;  %v280_v0 = vmov 0.0|0.0   ;;  %vm281_vm0 = vmmov 0   ;;  %v282_v1 = vmov 0.0   ;;  %v33_v2 = vld [vmem:[#allocation2] sm:$0xff] }
  0x14   :  { %198 = vmatprep.subr.bf16.mxu0 %v280_v0  ;;  %195 = vmatprep.mubr.msk.f32.mxu0 %vm281_vm0, %v282_v1  ;;  %v34_v3 = vld [vmem:[#allocation2 + $0x8] sm:$0xff]  ;;  %v35_v4 = vld [vmem:[#allocation2 + $0x10] sm:$0xff]  ;;  %v36_v6 = vld [vmem:[#allocation2 + $0x18] sm:$0xff]  ;;  %s283_s8 = smov [#allocation5]  }
  0x15   :  { %v199_v5 = vpack.c.bf16 %v34_v3, %v33_v2  ;;  %v202_v7 = vpack.c.bf16 %v36_v6, %v35_v4  ;;  %v37_v8 = vld [vmem:[#allocation2 + $0x20] sm:$0xff]  ;;  %v38_v9 = vld [vmem:[#allocation2 + $0x28] sm:$0xff]  ;;  %v39_v11 = vld [vmem:[#allocation2 + $0x30] sm:$0xff]  ;;  %s136_s9 = sshll.u32 %s283_s8, 4  ;;  %s137_s9 = int_to_ptr.vmem [resolvable:$true] %s136_s9 }
  0x16   :  { %v205_v10 = vpack.c.bf16 %v38_v9, %v37_v8  ;;  %v40_v12 = vld [vmem:[#allocation2 + $0x38] sm:$0xff]  ;;  %v41_v14 = vld [vmem:[#allocation2 + $0x40] sm:$0xff]  ;;  %v42_v15 = vld [vmem:[#allocation2 + $0x48] sm:$0xff]  ;;  %s251_s10 = scalar_lea.vmem %s137_s9, 128  ;;  %p256_p9 = scmp.lt.s32.totalorder %s137_s9, %s137_s9 }
  0x17   :  { %200 = vmatpush3.bf16.msra.mxu0 %v199_v5  ;;  %v208_v13 = vpack.c.bf16 %v40_v12, %v39_v11  ;;  %v211_v16 = vpack.c.bf16 %v42_v15, %v41_v14  ;;  %v43_v17 = vld [vmem:[#allocation2 + $0x50] sm:$0xff]  ;;  %v44_v18 = vld [vmem:[#allocation2 + $0x58] sm:$0xff]  ;;  %v45_v20 = vld [vmem:[#allocation2 + $0x60] sm:$0xff]  ;;  %p252_p8 = scmp.ne.s32.totalorder %s137_s9, %s251_s10  ;;  %p257_p10 = scmp.lt.s32.totalorder %s251_s10, %s251_s10 }
  0x18   :  { %201 = vmatprep.subr.bf16.mxu0 %v280_v0  ;;  %v214_v19 = vpack.c.bf16 %v44_v18, %v43_v17  ;;  %v46_v21 = vld [vmem:[#allocation2 + $0x68] sm:$0xff]  ;;  %v47_v23 = vld [vmem:[#allocation2 + $0x70] sm:$0xff]  ;;  %v48_v24 = vld [vmem:[#allocation2 + $0x78] sm:$0xff] }
  0x19   :  { %v217_v22 = vpack.c.bf16 %v46_v21, %v45_v20  ;;  %v220_v25 = vpack.c.bf16 %v48_v24, %v47_v23  ;;  %v32_v26 = vld [vmem:[%s342_s0] sm:$0xff]  ;;  %p258_p11 = por %p257_p10, %p256_p9 }
  0x1a   :  { %v145_v27 = vld [vmem:[%s344_s2] ss:$0 sm:$0xff] }
  0x1b   :  { %203 = vmatpush3.bf16.msra.mxu0 %v202_v7  ;;  %v127_v31 = vld [vmem:[%s345_s3] sm:$0xff]  ;;  %p259_p12 = pnand %p258_p11, %p252_p8 }
  0x1c   :  { %204 = vmatprep.subr.bf16.mxu0 %v280_v0 }
  0x1f   :  { %206 = vmatpush3.bf16.msra.mxu0 %v205_v10 }
  0x20   :  { %207 = vmatprep.subr.bf16.mxu0 %v280_v0 }
  0x23   :  { %209 = vmatpush3.bf16.msra.mxu0 %v208_v13 }
  0x24   :  { %210 = vmatprep.subr.bf16.mxu0 %v280_v0 }
  0x27   :  { %212 = vmatpush3.bf16.msra.mxu0 %v211_v16 }
  0x28   :  { %213 = vmatprep.subr.bf16.mxu0 %v280_v0 }
  0x2b   :  { %215 = vmatpush3.bf16.msra.mxu0 %v214_v19 }
  0x2c   :  { %216 = vmatprep.subr.bf16.mxu0 %v280_v0 }
  0x2f   :  { %218 = vmatpush3.bf16.msra.mxu0 %v217_v22 }
  0x30   :  { %219 = vmatprep.subr.bf16.mxu0 %v280_v0 }
  0x33   :  { %221 = vmatpush3.bf16.msra.mxu0 %v220_v25 }
  0x36   :  { %196 = vmatmul.mubr.f32.vlgmr.msra.gmra.mrb[0].mxu0 %v32_v26 }
 0x109   :  { %v122_v28 = vpop.f32.mrb[0].mxu0 }
 0x10a   :  { %v123_v29 = vadd.f32 %v145_v27, %v122_v28  ;;  %v197_v30 = vpop.f32.mrb[1].mxu0 }
 0x10c   :  { %v126_v32 = vmax.f32 %v123_v29, 0.0 }
 0x10e   :  { %v128_v33 = vadd.f32 %v127_v31, %v126_v32 }
 0x110   :  { %129 = vst [vmem:[#allocation5] sm:$0xff] %v128_v33 }
 0x111   :  { %262 = shalt.err (!%p259_p12)
}
 0x112   :  { %s263_s11 = scalar_lea.hbm %s346_s4, 128 }
 0x113   :  { %p264_p13 = scmp.ne.s32.totalorder %s346_s4, %s263_s11  ;;  %p267_p0 = scmp.lt.u32.totalorder %s263_s11, %s346_s4 }
 0x115   :  { %p269_p1 = pnand %p267_p0, %p264_p13 }
 0x117   :  { %272 = shalt.err (!%p269_p1)
}
 0x118   :  { %139 = dma.vmem_to_hbm [thread:$0]  %s137_s9, 128, %s346_s4, [#allocation4]  }
 0x119   :  { %275 = dma.done.wait [#allocation4], 128  }
 0x11a   :  { %276 = vsyncadd [#allocation4], 4294967168 }
 0x11b   :  { %143 = vsyncpa [#allocation3], 1 }
 0x11c   :  { %144 = vsyncpa [#allocation4], 1 }

</bundles_post_ra>
